<compile_context>
chip_gen: v6e
topology: v6e:2x2x1
jax: 0.10.0
libtpu: 0.0.40
codegen_flags: <defaults>
</compile_context>

<pallas_src>
import functools

import jax
import jax.numpy as jnp
from jax.experimental import pallas as pl
from jax.experimental.pallas import tpu as pltpu


def _round_up(x, m):
    return ((x + m - 1) // m) * m


def _label_smoothing_kernel(pred_ref, tgt_ref, out_ref, *, confidence,
                            smooth_val, n_valid, tile_n, classes):
    """One (TILE_N, C) tile -> one partial-sum block.

    pred_ref : (tile_n, classes) VMEM, native dtype (batch on sublanes)
    tgt_ref  : (1, tile_n) i32 VMEM (target class id per sample)
    out_ref  : (1, 8, 128) f32 VMEM (per-tile partial loss sum, broadcast)
    """
    # Cast then transpose once: classes -> sublanes, batch -> lanes (lane-dense).
    x = pred_ref[...].astype(jnp.float32)                      # (T, C)
    xt = jnp.transpose(x)                                      # (C, T)
    tgt = tgt_ref[...]                                         # (1, T) int32

    # Numerically stable log-sum-exp over the class (sublane) axis.
    col_max = jnp.max(xt, axis=0, keepdims=True)                # (1, T)
    shifted = xt - col_max                                      # (C, T)
    lse = jnp.log(jnp.sum(jnp.exp(shifted), axis=0, keepdims=True))  # (1, T)

    # Fused smoothing weights (sum_c w = 1)  =>  loss = lse - <w, shifted>.
    class_ids = jax.lax.broadcasted_iota(jnp.int32, (classes, tile_n), 0)
    w = jnp.where(class_ids == tgt, jnp.float32(confidence),
                  jnp.float32(smooth_val))                      # (C, T)
    wdot = jnp.sum(w * shifted, axis=0, keepdims=True)          # (1, T)
    loss = lse - wdot                                           # (1, T)

    def _store(vals):
        out_ref[...] = jnp.full((1, 8, 128), jnp.sum(vals), dtype=jnp.float32)

    rem = n_valid - (n_valid // tile_n) * tile_n                # static python int
    if rem == 0:
        # Every tile is full: no masking anywhere.
        _store(loss)
    else:
        last = pl.num_programs(0) - 1

        @pl.when(pl.program_id(0) == last)
        def _():
            # Only the last tile pays for the iota/compare/select.  The select
            # also quarantines any Inf/NaN coming from the out-of-bounds
            # (unpadded) tail columns of pred/target.
            col = jax.lax.broadcasted_iota(jnp.int32, (1, tile_n), 1)
            _store(jnp.where(col < rem, loss, 0.0))

        @pl.when(pl.program_id(0) != last)
        def _():
            _store(loss)


def label_smoothing_loss(pred, target, *, classes=18, smoothing=0.0,
                         block_n=16384):
    """JAX/Pallas equivalent of LabelSmoothingLoss(classes, smoothing).forward.

    pred:   (N, classes) float array (any float dtype), native layout
    target: (N,) integer class ids in [0, classes)
    """
    assert pred.ndim == 2 and pred.shape[1] == classes
    assert target.shape == (pred.shape[0],)
    n = pred.shape[0]
    confidence = 1.0 - smoothing
    smooth_val = smoothing / (classes - 1) if classes > 1 else 0.0

    # Tile over the batch; blocks are (tile_n, classes) in the native layout.
    n_lane = _round_up(n, 128)
    tile_n = min(_round_up(block_n, 128), n_lane)
    # Keep >=2 grid steps when the batch allows it so the "parallel" grid axis
    # can be sharded across both TensorCores on v7x.
    if tile_n >= n_lane and n_lane >= 256:
        tile_n = _round_up(-(-n_lane // 2), 128)
    num_tiles = -(-n // tile_n)

    # Free reshape (no data movement); ragged tail is masked in-kernel.
    tgt_row = target.astype(jnp.int32).reshape(1, n)

    kernel = functools.partial(
        _label_smoothing_kernel,
        confidence=confidence,
        smooth_val=smooth_val,
        n_valid=n,
        tile_n=tile_n,
        classes=classes,
    )

    itemsize = pred.dtype.itemsize
    # VMEM budget: the native (tile_n, classes) block is lane-padded to 128.
    vmem_bytes = (2 * tile_n * 128 * itemsize      # double-buffered pred block
                  + 2 * tile_n * 8 * 4             # double-buffered target row
                  + tile_n * 128 * 4               # f32 cast copy of the block
                  + tile_n * 32 * 4 * 8            # transposed f32 temporaries
                  + (4 << 20))                     # output / internal headroom
    vmem_limit = int(min(64 << 20, max(32 << 20, vmem_bytes)))

    cost = pl.CostEstimate(
        flops=int(10 * n * classes),
        transcendentals=int(n * (classes + 1)),
        bytes_accessed=int(n * classes * itemsize + n * 4
                           + num_tiles * 8 * 128 * 4),
    )

    partials = pl.pallas_call(
        kernel,
        out_shape=jax.ShapeDtypeStruct((num_tiles, 8, 128), jnp.float32),
        grid=(num_tiles,),
        in_specs=[
            pl.BlockSpec((tile_n, classes), lambda i: (i, 0)),
            pl.BlockSpec((1, tile_n), lambda i: (0, i)),
        ],
        out_specs=pl.BlockSpec((1, 8, 128), lambda i: (i, 0, 0)),
        compiler_params=pltpu.CompilerParams(
            dimension_semantics=("parallel",),
            vmem_limit_bytes=vmem_limit),
        cost_estimate=cost,
    )(pred, tgt_row)

    # Tiny final reduction (num_tiles scalars) + mean over the batch.
    return jnp.sum(partials[:, 0, 0]) / jnp.float32(n)


def _reference(pred, target, *, classes=18, smoothing=0.0):
    """Pure-JAX reference mirroring the PyTorch module (for verification)."""
    confidence = 1.0 - smoothing
    smooth_val = smoothing / (classes - 1) if classes > 1 else 0.0
    logp = jax.nn.log_softmax(pred.astype(jnp.float32), axis=-1)
    true_dist = jnp.full_like(logp, smooth_val)
    true_dist = true_dist.at[jnp.arange(pred.shape[0]), target].set(confidence)
    return jnp.mean(jnp.sum(-true_dist * logp, axis=-1))


if __name__ == "__main__":
    classes = 18
    key = jax.random.PRNGKey(0)

    # Case 1: tiny batch (single, partially-filled tile), f32, smoothing=0.1.
    n1 = 8
    k1p, k1t, key = jax.random.split(key, 3)
    pred1 = jax.random.normal(k1p, (n1, classes), dtype=jnp.float32)
    tgt1 = jax.random.randint(k1t, (n1,), 0, classes, dtype=jnp.int32)
    out1 = jax.block_until_ready(
        label_smoothing_loss(pred1, tgt1, classes=classes, smoothing=0.1))
    ref1 = _reference(pred1, tgt1, classes=classes, smoothing=0.1)
    assert jnp.allclose(out1, ref1, atol=1e-5, rtol=1e-5), (out1, ref1)

    # Case 2: ragged batch over several tiles, bf16 input (exercises grid,
    # masking of the unpadded tail, and the in-kernel cast+transpose).
    n2 = 300
    k2p, k2t, key = jax.random.split(key, 3)
    pred2 = jax.random.normal(k2p, (n2, classes), dtype=jnp.bfloat16)
    tgt2 = jax.random.randint(k2t, (n2,), 0, classes, dtype=jnp.int32)
    out2 = jax.block_until_ready(
        label_smoothing_loss(pred2, tgt2, classes=classes, smoothing=0.1,
                             block_n=128))
    ref2 = _reference(pred2, tgt2, classes=classes, smoothing=0.1)
    assert jnp.allclose(out2, ref2, atol=1e-4, rtol=1e-4), (out2, ref2)

    # Case 3: batch that triggers the ">=2 tiles for v7x" split, smoothing=0.
    n3 = 512
    k3p, k3t, key = jax.random.split(key, 3)
    pred3 = jax.random.normal(k3p, (n3, classes), dtype=jnp.float32)
    tgt3 = jax.random.randint(k3t, (n3,), 0, classes, dtype=jnp.int32)
    out3 = jax.block_until_ready(
        label_smoothing_loss(pred3, tgt3, classes=classes, smoothing=0.0))
    ref3 = _reference(pred3, tgt3, classes=classes, smoothing=0.0)
    assert jnp.allclose(out3, ref3, atol=1e-5, rtol=1e-5), (out3, ref3)

    print("KERNEL_OK")
</pallas_src>

<mosaic_0001>
module attributes {stable_mosaic.version = 11 : i64} {
  func.func @_label_smoothing_kernel(%arg0: i32, %arg1: memref<128x18xf32, #tpu.memory_space<vmem>>, %arg2: memref<1x128xi32, #tpu.memory_space<vmem>>, %arg3: memref<1x8x128xf32, #tpu.memory_space<vmem>>) attributes {dimension_semantics = [#tpu.dimension_semantics<parallel>], iteration_bounds = array<i64: 1>, scalar_prefetch = 0 : i64, scratch_operands = 0 : i64, tpu.core_type = #tpu.core_type<tc>, window_params = [{transform_indices = @transform_0, window_bounds = array<i64: 128, 18>}, {transform_indices = @transform_1, window_bounds = array<i64: 1, 128>}, {transform_indices = @transform_2, window_bounds = array<i64: 1, 8, 128>}]} {
    %c0 = arith.constant 0 : index
    %c0_0 = arith.constant 0 : index
    %0 = vector.load %arg1[%c0, %c0_0] : memref<128x18xf32, #tpu.memory_space<vmem>>, vector<128x18xf32>
    %1 = tpu.transpose %0, [1, 0] : vector<128x18xf32> -> vector<18x128xf32>
    %c0_1 = arith.constant 0 : index
    %c0_2 = arith.constant 0 : index
    %2 = vector.load %arg2[%c0_1, %c0_2] : memref<1x128xi32, #tpu.memory_space<vmem>>, vector<1x128xi32>
    %cst = arith.constant dense<0xFF800000> : vector<128xf32>
    %3 = vector.multi_reduction <maximumf>, %1, %cst [0] : vector<18x128xf32> to vector<128xf32>
    %4 = vector.shape_cast %3 : vector<128xf32> to vector<1x128xf32>
    %5 = vector.broadcast %4 : vector<1x128xf32> to vector<18x128xf32>
    %6 = arith.subf %1, %5 : vector<18x128xf32>
    %7 = math.exp %6 : vector<18x128xf32>
    %cst_3 = arith.constant dense<0.000000e+00> : vector<128xf32>
    %8 = vector.multi_reduction <add>, %7, %cst_3 [0] : vector<18x128xf32> to vector<128xf32>
    %9 = vector.shape_cast %8 : vector<128xf32> to vector<1x128xf32>
    %10 = math.log %9 : vector<1x128xf32>
    %11 = tpu.iota {dimensions = array<i32: 0>} : vector<18x128xi32>
    %12 = vector.broadcast %2 : vector<1x128xi32> to vector<18x128xi32>
    %13 = arith.cmpi eq, %11, %12 : vector<18x128xi32>
    %cst_4 = arith.constant 0.899999976 : f32
    %cst_5 = arith.constant 0.00588235306 : f32
    %14 = vector.broadcast %cst_4 : f32 to vector<18x128xf32>
    %15 = vector.broadcast %cst_5 : f32 to vector<18x128xf32>
    %16 = arith.select %13, %14, %15 : vector<18x128xi1>, vector<18x128xf32>
    %17 = arith.mulf %16, %6 : vector<18x128xf32>
    %cst_6 = arith.constant dense<0.000000e+00> : vector<128xf32>
    %18 = vector.multi_reduction <add>, %17, %cst_6 [0] : vector<18x128xf32> to vector<128xf32>
    %19 = vector.shape_cast %18 : vector<128xf32> to vector<1x128xf32>
    %20 = arith.subf %10, %19 : vector<1x128xf32>
    %c0_i32 = arith.constant 0 : i32
    %21 = arith.cmpi eq, %arg0, %c0_i32 : i32
    %22 = arith.extui %21 : i1 to i32
    %c0_i32_7 = arith.constant 0 : i32
    %23 = arith.cmpi ne, %22, %c0_i32_7 : i32
    scf.if %23 {
      %27 = tpu.iota {dimensions = array<i32: 1>} : vector<1x128xi32>
      %c8_i32 = arith.constant 8 : i32
      %28 = vector.broadcast %c8_i32 : i32 to vector<1x128xi32>
      %29 = arith.cmpi slt, %27, %28 : vector<1x128xi32>
      %cst_10 = arith.constant 0.000000e+00 : f32
      %30 = vector.broadcast %cst_10 : f32 to vector<1x128xf32>
      %31 = arith.select %29, %20, %30 : vector<1x128xi1>, vector<1x128xf32>
      %32 = vector.shape_cast %31 : vector<1x128xf32> to vector<1x1x128xf32>
      %cst_11 = arith.constant dense<0.000000e+00> : vector<1xf32>
      %33 = vector.multi_reduction <add>, %32, %cst_11 [1, 2] : vector<1x1x128xf32> to vector<1xf32>
      %34 = vector.shape_cast %33 : vector<1xf32> to vector<1x1x1xf32>
      %35 = vector.extract %34[0, 0, 0] : f32 from vector<1x1x1xf32>
      %36 = vector.broadcast %35 : f32 to vector<1x8x128xf32>
      %c0_12 = arith.constant 0 : index
      %c0_13 = arith.constant 0 : index
      %c0_14 = arith.constant 0 : index
      %37 = vector.load %arg3[%c0_12, %c0_13, %c0_14] : memref<1x8x128xf32, #tpu.memory_space<vmem>>, vector<1x8x128xf32>
      tpu.vector_store %arg3[%c0_12, %c0_13, %c0_14], %36 {strides = array<i32>} : memref<1x8x128xf32, #tpu.memory_space<vmem>>, vector<1x8x128xf32>,
    } else {
    }
    %c0_i32_8 = arith.constant 0 : i32
    %24 = arith.cmpi ne, %arg0, %c0_i32_8 : i32
    %25 = arith.extui %24 : i1 to i32
    %c0_i32_9 = arith.constant 0 : i32
    %26 = arith.cmpi ne, %25, %c0_i32_9 : i32
    scf.if %26 {
      %27 = vector.shape_cast %20 : vector<1x128xf32> to vector<1x1x128xf32>
      %cst_10 = arith.constant dense<0.000000e+00> : vector<1xf32>
      %28 = vector.multi_reduction <add>, %27, %cst_10 [1, 2] : vector<1x1x128xf32> to vector<1xf32>
      %29 = vector.shape_cast %28 : vector<1xf32> to vector<1x1x1xf32>
      %30 = vector.extract %29[0, 0, 0] : f32 from vector<1x1x1xf32>
      %31 = vector.broadcast %30 : f32 to vector<1x8x128xf32>
      %c0_11 = arith.constant 0 : index
      %c0_12 = arith.constant 0 : index
      %c0_13 = arith.constant 0 : index
      %32 = vector.load %arg3[%c0_11, %c0_12, %c0_13] : memref<1x8x128xf32, #tpu.memory_space<vmem>>, vector<1x8x128xf32>
      tpu.vector_store %arg3[%c0_11, %c0_12, %c0_13], %31 {strides = array<i32>} : memref<1x8x128xf32, #tpu.memory_space<vmem>>, vector<1x8x128xf32>,
    } else {
    }
    return
  }
  func.func @transform_0(%arg0: i32) -> (i32, i32) {
    %c0_i32 = arith.constant 0 : i32
    %c0_i32_0 = arith.constant 0 : i32
    return %arg0, %c0_i32 : i32, i32
  }
  func.func @transform_1(%arg0: i32) -> (i32, i32) {
    %c0_i32 = arith.constant 0 : i32
    %c0_i32_0 = arith.constant 0 : i32
    return %c0_i32, %arg0 : i32, i32
  }
  func.func @transform_2(%arg0: i32) -> (i32, i32, i32) {
    %c0_i32 = arith.constant 0 : i32
    %c0_i32_0 = arith.constant 0 : i32
    %c0_i32_1 = arith.constant 0 : i32
    return %arg0, %c0_i32, %c0_i32_0 : i32, i32, i32
  }
}

</mosaic_0001>

<bundles_post_ra>
// kernel: tpu_custom_call.1
= control target key start
LH: loop header
LB: loop body
LE: loop exit
PB: predicated region body
PF: predicated region fallthrough
CT: control target
= control target key end

     0   :  { %7 = vsyncpa [#allocation3], 0  ;;  %s277_s0 = inlined_call_operand.hbm [shape: f32[8,18], index: 0, kind: input, shape index: {}]   ;;  %s278_s1 = inlined_call_operand.vmem [shape: s32[1,8], index: 1, kind: input, shape index: {}]   ;;  %s279_s2 = inlined_call_operand.hbm [shape: f32[1,8,128], index: 2, kind: output, shape index: {}]  }
   0x1   :  { %8 = vsyncpa [#allocation4], 0 }
   0x2   :  { %13 = vsyncadd [#allocation3], 1920  ;;  %s245_s9 = smov [#allocation2]  }
   0x3   :  { %s14_s10 = sshll.u32 %s245_s9, 4  ;;  %s15_s10 = int_to_ptr.vmem [resolvable:$true] %s14_s10 }
   0x4   :  { %s209_s11 = scalar_lea.vmem %s15_s10, 128  ;;  %s213_s12 = scalar_lea.vmem %s15_s10, 2048 }
   0x5   :  { %p210_p0 = scmp.ne.s32.totalorder %s15_s10, %s209_s11  ;;  %p214_p1 = scmp.lt.s32.totalorder %s15_s10, %s15_s10 }
   0x6   :  { %p215_p2 = scmp.lt.s32.totalorder %s213_s12, %s209_s11 }
   0x8   :  { %p216_p3 = por %p215_p2, %p214_p1 }
   0xa   :  { %p217_p4 = pnand %p216_p3, %p210_p0 }
   0xc   :  { %220 = shalt.err (!%p217_p4)
}
   0xd   :  { %s246_s13 = smov 128   ;;  %s247_s14 = smov 8  }
   0xe   :  { %20 = dma.hbm_to_vmem [thread:$0]  %s277_s0, 128, %s15_s10, [#allocation3], %s246_s13, %s246_s13, %s247_s14  }
   0xf   :  { %241 = dma.done.wait [#allocation3], 2048  }
  0x10   :  { %242 = vsyncadd [#allocation3], 4294965248  ;;  %v26_v0 = vld [vmem:[#allocation2] sm:$0xff]  ;;  %v27_v1 = vld [vmem:[#allocation2 + $0x8] sm:$0xff]  ;;  %vm75_vm0 = vcmask 1041408   ;;  %v105_v28 = vlaneseq  ;;  %vm140_vm5 = vcmask 1040384  }
  0x11   :  { %42 = vxpose.xlu0.b32.start [1/16] (narrow) %v26_v0, 24  ;;  %v28_v2 = vld [vmem:[#allocation2 + $0x10] sm:$0xff]  ;;  %v29_v3 = vld [vmem:[#allocation2 + $0x18] sm:$0xff]  ;;  %v30_v4 = vld [vmem:[#allocation2 + $0x20] sm:$0xff]  ;;  %v248_v39 = vmov 0.005882353  }
  0x12   :  { %v31_v5 = vld [vmem:[#allocation2 + $0x28] sm:$0xff]  ;;  %v32_v6 = vld [vmem:[#allocation2 + $0x30] sm:$0xff]  ;;  %v33_v7 = vld [vmem:[#allocation2 + $0x38] sm:$0xff]  ;;  %v106_v35 = vshrl.u32 %v105_v28, 7 }
  0x13   :  { %v34_v8 = vld [vmem:[#allocation2 + $0x40] sm:$0xff]  ;;  %v35_v9 = vld [vmem:[#allocation2 + $0x48] sm:$0xff]  ;;  %v36_v10 = vld [vmem:[#allocation2 + $0x50] sm:$0xff] }
  0x14   :  { %v37_v11 = vld [vmem:[#allocation2 + $0x58] sm:$0xff]  ;;  %v38_v12 = vld [vmem:[#allocation2 + $0x60] sm:$0xff]  ;;  %v39_v13 = vld [vmem:[#allocation2 + $0x68] sm:$0xff]  ;;  %v107_v36 = vadd.s32 8, %v106_v35  ;;  %v108_v38 = vadd.s32 16, %v106_v35 }
  0x15   :  { %43 = vxpose.xlu0.b32.cont [2/16] (narrow) %v27_v1, 24  ;;  %v40_v14 = vld [vmem:[#allocation2 + $0x70] sm:$0xff]  ;;  %v41_v15 = vld [vmem:[#allocation2 + $0x78] sm:$0xff]  ;;  %v185_v37 = vld [vmem:[%s278_s1] ss:$0 sm:$0xff]  ;;  %s249_s1 = smov [#allocation5]  }
  0x16   :  { %vm113_vm1 = vcmp.eq.s32.totalorder %v106_v35, %v185_v37  ;;  %vm114_vm2 = vcmp.eq.s32.totalorder %v107_v36, %v185_v37  ;;  %vm115_vm3 = vcmp.eq.s32.totalorder %v108_v38, %v185_v37  ;;  %s176_s18 = sshll.u32 %s249_s1, 4  ;;  %s177_s18 = int_to_ptr.vmem [resolvable:$true] %s176_s18 }
  0x17   :  { %v116_v40 = vsel %vm113_vm1, 0.9, %v248_v39  ;;  %v117_v41 = vsel %vm114_vm2, 0.9, %v248_v39  ;;  %v118_v42 = vsel %vm115_vm3, 0.9, %v248_v39  ;;  %p226_p6 = scmp.lt.s32.totalorder %s177_s18, %s177_s18 }
  0x18   :  { %s221_s20 = scalar_lea.vmem %s177_s18, 128 }
  0x19   :  { %44 = vxpose.xlu0.b32.cont [3/16] (narrow) %v28_v2, 24  ;;  %v137_v2 = vand.u32 127, %v105_v28  ;;  %p222_p5 = scmp.ne.s32.totalorder %s177_s18, %s221_s20  ;;  %p227_p7 = scmp.lt.s32.totalorder %s221_s20, %s221_s20 }
  0x1b   :  { %vm138_vm4 = vcmp.lt.s32.totalorder %v137_v2, 8  ;;  %p228_p8 = por %p227_p7, %p226_p6 }
  0x1d   :  { %45 = vxpose.xlu0.b32.cont [4/16] (narrow) %v29_v3, 24  ;;  %p229_p9 = pnand %p228_p8, %p222_p5 }
  0x21   :  { %46 = vxpose.xlu0.b32.cont [5/16] (narrow) %v30_v4, 24 }
  0x25   :  { %47 = vxpose.xlu0.b32.cont [6/16] (narrow) %v31_v5, 24 }
  0x29   :  { %48 = vxpose.xlu0.b32.cont [7/16] (narrow) %v32_v6, 24 }
  0x2d   :  { %49 = vxpose.xlu0.b32.cont [8/16] (narrow) %v33_v7, 24 }
  0x31   :  { %50 = vxpose.xlu0.b32.cont [9/16] (narrow) %v34_v8, 24 }
  0x35   :  { %51 = vxpose.xlu0.b32.cont [10/16] (narrow) %v35_v9, 24 }
  0x39   :  { %52 = vxpose.xlu0.b32.cont [11/16] (narrow) %v36_v10, 24 }
  0x3d   :  { %53 = vxpose.xlu0.b32.cont [12/16] (narrow) %v37_v11, 24 }
  0x41   :  { %54 = vxpose.xlu0.b32.cont [13/16] (narrow) %v38_v12, 24 }
  0x45   :  { %55 = vxpose.xlu0.b32.cont [14/16] (narrow) %v39_v13, 24 }
  0x49   :  { %56 = vxpose.xlu0.b32.cont [15/16] (narrow) %v40_v14, 24 }
  0x4d   :  { %57 = vxpose.xlu0.b32.end [16/16] (narrow) %v41_v15, 24 }
  0x8d   :  { %v58_v16 = vpop.trf.xlu0 }
  0x91   :  { %v59_v17 = vpop.trf.xlu0 }
  0x92   :  { %v77_v18 = vmax.f32 %v58_v16, %v59_v17 }
  0x95   :  { %v60_v19 = vpop.trf.xlu0 }
  0x96   :  { %v76_v20 = vsel %vm75_vm0, %v60_v19, -inf }
  0x97   :  { %v78_v21 = vmax.f32 %v77_v18, %v76_v20 }
  0x99   :  { %v79_v22 = vrot.slane %v78_v21, 4 }
  0x9b   :  { %v80_v23 = vmax.f32 %v78_v21, %v79_v22 }
  0x9d   :  { %v81_v24 = vrot.slane %v80_v23, 2 }
  0x9f   :  { %v82_v25 = vmax.f32 %v80_v23, %v81_v24 }
  0xa1   :  { %v83_v26 = vrot.slane %v82_v25, 1 }
  0xa3   :  { %v84_v27 = vmax.f32 %v82_v25, %v83_v26 }
  0xa5   :  { %v85_v29 = vsub.f32 %v58_v16, %v84_v27  ;;  %v86_v30 = vsub.f32 %v59_v17, %v84_v27  ;;  %v87_v31 = vsub.f32 %v60_v19, %v84_v27 }
  0xa7   :  { %v88_v32 = vmul.f32 1.442695, %v85_v29  ;;  %v90_v33 = vmul.f32 1.442695, %v86_v30  ;;  %v92_v34 = vmul.f32 1.442695, %v87_v31  ;;  %v119_v44 = vmul.f32 %v116_v40, %v85_v29 }
  0xa8   :  { %v120_v45 = vmul.f32 %v117_v41, %v86_v30  ;;  %v121_v47 = vmul.f32 %v118_v42, %v87_v31 }
  0xa9   :  { %193 = vpow2.f32 %v88_v32 }
  0xaa   :  { %195 = vpow2.f32 %v90_v33  ;;  %v122_v52 = vadd.f32 %v120_v45, %v119_v44  ;;  %v123_v53 = vsel %vm75_vm0, %v121_v47, 0.0 }
  0xab   :  { %197 = vpow2.f32 %v92_v34 }
  0xac   :  { %v124_v56 = vadd.f32 %v123_v53, %v122_v52 }
  0xae   :  { %v125_v59 = vrot.slane %v124_v56, 4 }
  0xb0   :  { %v126_v61 = vadd.f32 %v125_v59, %v124_v56 }
  0xb2   :  { %v127_v63 = vrot.slane %v126_v61, 2 }
  0xb4   :  { %v128_v0 = vadd.f32 %v127_v63, %v126_v61 }
  0xb6   :  { %v194_v43 = vpop.eup %193  ;;  %v129_v1 = vrot.slane %v128_v0, 1 }
  0xb7   :  { %v196_v46 = vpop.eup %195 }
  0xb8   :  { %v198_v48 = vpop.eup %197  ;;  %v94_v49 = vadd.f32 %v196_v46, %v194_v43  ;;  %v130_v5 = vadd.f32 %v129_v1, %v128_v0 }
  0xb9   :  { %v95_v50 = vsel %vm75_vm0, %v198_v48, 0.0 }
  0xba   :  { %v96_v51 = vadd.f32 %v95_v50, %v94_v49 }
  0xbc   :  { %v97_v54 = vrot.slane %v96_v51, 4 }
  0xbe   :  { %v98_v55 = vadd.f32 %v97_v54, %v96_v51 }
  0xc0   :  { %v99_v57 = vrot.slane %v98_v55, 2 }
  0xc2   :  { %v100_v58 = vadd.f32 %v99_v57, %v98_v55 }
  0xc4   :  { %v101_v60 = vrot.slane %v100_v58, 1 }
  0xc6   :  { %v102_v62 = vadd.f32 %v101_v60, %v100_v58 }
  0xc8   :  { %199 = vlog2.f32 %v102_v62 }
  0xd5   :  { %v200_v3 = vpop.eup %199 }
  0xd6   :  { %v104_v4 = vmul.f32 0.6931472, %v200_v3 }
  0xd8   :  { %v131_v6 = vsub.f32 %v104_v4, %v130_v5 }
  0xda   :  { %v139_v7 = vsel %vm138_vm4, %v131_v6, 0.0 }
  0xdb   :  { %v141_v8 = vsel %vm140_vm5, %v139_v7, 0.0 }
  0xdc   :  { %142 = vadd.xlane.f32.xlu1 %v141_v8 }
 0x165   :  { %v143_v9 = vpop.xlane.xlu1 %142 }
 0x166   :  { %v144_v10 = vrot.slane %v143_v9, 4 }
 0x168   :  { %v145_v11 = vadd.f32 %v144_v10, %v143_v9 }
 0x16a   :  { %v146_v12 = vrot.slane %v145_v11, 2 }
 0x16c   :  { %v147_v13 = vadd.f32 %v146_v12, %v145_v11 }
 0x16e   :  { %v148_v14 = vrot.slane %v147_v13, 1 }
 0x170   :  { %v149_v15 = vadd.f32 %v148_v14, %v147_v13 }
 0x172   :  { %186 = vpush %v149_v15 }
 0x1a3   :  { %s187_s19 = spop %186 }
 0x1a4   :  { %v151_v16 = vstv %s187_s19 }
 0x1a5   :  { %152 = vst [vmem:[#allocation5] sm:$0xff] %v151_v16 }
 0x1a6   :  { %232 = shalt.err (!%p229_p9)
}
 0x1a7   :  { %179 = dma.vmem_to_hbm [thread:$0]  %s177_s18, 128, %s279_s2, [#allocation4]  }
 0x1a8   :  { %243 = dma.done.wait [#allocation4], 128  }
 0x1a9   :  { %244 = vsyncadd [#allocation4], 4294967168 }
 0x1aa   :  { %183 = vsyncpa [#allocation3], 1 }
 0x1ab   :  { %184 = vsyncpa [#allocation4], 1 }

</bundles_post_ra>
